<compile_context>
chip_gen: v7x
topology: tpu7x:2x2x1
jax: 0.10.0
libtpu: 0.0.40
codegen_flags: <defaults>
</compile_context>

<pallas_src>
import jax
import jax.numpy as jnp
from jax.experimental import pallas as pl
from jax.experimental.pallas import tpu as pltpu


# --------------------------------------------------------------------------- #
# Kernel
# --------------------------------------------------------------------------- #
def _basic_block_kernel(x_ref, t1_ref, b1_ref, t2_ref, b2_ref, out_ref, pad_ref):
    """Fused conv1+bn1+relu -> conv2+bn2+residual+relu for a block of images.

    x_ref:   (B, H, W*C)   bf16  activation rows, (w, c) flattened on lanes
    t1_ref:  (3*W*C, W*C)  bf16  K-stacked block-Toeplitz conv1 weight (BN1 folded)
    b1_ref:  (1, W*C)      f32   BN1 bias tiled over w
    t2_ref:  (3*W*C, W*C)  bf16  K-stacked block-Toeplitz conv2 weight (BN2 folded)
    b2_ref:  (1, W*C)      f32   BN2 bias tiled over w
    out_ref: (B, H, W*C)   f32
    pad_ref: VMEM (B, H+2, W*C) f32 scratch: per-image rows with zero vertical halo.
    """
    B, H, WC = x_ref.shape
    M = B * H
    f32 = jnp.float32
    bf16 = jnp.bfloat16

    # Re-zero the per-image halo rows every step.  Do NOT guard this with
    # program_id == 0: each TensorCore owns its own scratch under megacore.
    zrow = jnp.zeros((B, 1, WC), f32)
    pad_ref[:, 0:1, :] = zrow
    pad_ref[:, H + 1:H + 2, :] = zrow

    def conv_rows(act_f32, t_ref):
        # act_f32: (B, H, WC) f32.  Build the K-stacked LHS [row-1 | row | row+1]
        # (zeros at the vertical image borders via the halo rows) and run ONE
        # (M, 3*WC) x (3*WC, WC) MXU matmul with f32 accumulation.
        pad_ref[:, 1:H + 1, :] = act_f32
        lhs = jnp.concatenate(
            [pad_ref[:, 0:H, :], act_f32, pad_ref[:, 2:H + 2, :]], axis=-1)
        lhs = lhs.reshape(M, 3 * WC).astype(bf16)
        return jnp.dot(lhs, t_ref[...], preferred_element_type=f32)   # (M, WC)

    # ---- stage 1: conv1 + bn1 + relu (intermediate never leaves VMEM) ----
    x = x_ref[...].astype(f32)                                          # (B, H, WC)
    h = jnp.maximum(conv_rows(x, t1_ref) + b1_ref[...], 0.0)           # (M, WC)

    # ---- stage 2: conv2 + bn2 + identity residual + relu ----
    y = conv_rows(h.reshape(B, H, WC), t2_ref) + b2_ref[...]
    y = y + x.reshape(M, WC)                                            # residual
    out_ref[...] = jnp.maximum(y, 0.0).reshape(B, H, WC).astype(out_ref.dtype)


# --------------------------------------------------------------------------- #
# Per-weight-set preparation (hoist out of the per-step forward path)
# --------------------------------------------------------------------------- #
def _fold_bn(gamma, beta, mean, var, eps=1e-5):
    scale = gamma / jnp.sqrt(var + eps)
    return scale, beta - mean * scale


def _toeplitz_kstacked(w_oihw, scale, width):
    """Fold the BN scale into a 3x3 conv weight (OIHW) and build the K-stacked
    block-Toeplitz matrix of shape (3*W*Cin, W*Cout):
        T[kh*W*Cin + w_in*Cin + ci, w_out*Cout + co] = W[co, ci, kh, w_in - w_out + 1]
    (zero outside the 3-wide band).  Horizontal zero padding is folded into the band
    structure; vertical padding is handled by the kernel's halo rows.
    """
    cout, cin, kh_sz, kw_sz = w_oihw.shape
    w_hwio = jnp.transpose(w_oihw * scale[:, None, None, None], (2, 3, 1, 0))
    widx = jnp.arange(width)
    mats = []
    for kh in range(kh_sz):
        t4 = jnp.zeros((width, cin, width, cout), jnp.float32)
        for kw in range(kw_sz):
            band = (widx[:, None] == (widx[None, :] + kw - 1)).astype(jnp.float32)
            t4 = t4 + band[:, None, :, None] * w_hwio[kh, kw][None, :, None, :]
        mats.append(t4.reshape(width * cin, width * cout))
    return jnp.concatenate(mats, axis=0)               # (3*W*Cin, W*Cout)


def prepare_basic_block(params, width):
    """Build folded/K-stacked bf16 weights once per weight set (not per forward)."""
    cout = params["conv1_w"].shape[0]
    s1, bias1 = _fold_bn(params["bn1_gamma"], params["bn1_beta"],
                         params["bn1_mean"], params["bn1_var"])
    s2, bias2 = _fold_bn(params["bn2_gamma"], params["bn2_beta"],
                         params["bn2_mean"], params["bn2_var"])
    return {
        "t1": _toeplitz_kstacked(params["conv1_w"], s1, width).astype(jnp.bfloat16),
        "t2": _toeplitz_kstacked(params["conv2_w"], s2, width).astype(jnp.bfloat16),
        "b1": jnp.tile(bias1, width).reshape(1, width * cout).astype(jnp.float32),
        "b2": jnp.tile(bias2, width).reshape(1, width * cout).astype(jnp.float32),
    }


# --------------------------------------------------------------------------- #
# Forward wrapper
# --------------------------------------------------------------------------- #
def _pick_batch_block(n, h, max_rows=128):
    """Largest divisor of n with b*h <= max_rows, preferring >= 2 grid steps."""
    divs = [b for b in range(1, n + 1) if n % b == 0 and b * h <= max(max_rows, h)]
    multi = [b for b in divs if n // b >= 2]
    return max(multi) if multi else max(divs)


def basic_block_forward(x_nchw, prep):
    """BasicBlock forward (stride=1, no downsample). x_nchw: (N, C, H, W) f32."""
    N, C, H, W = x_nchw.shape
    WC = W * C
    assert prep["t1"].shape == (3 * WC, WC), "identity residual needs Cin == Cout"
    assert WC % 128 == 0, "W*C must be a multiple of 128 (lane-dense rows)"
    assert H % 8 == 0, "H must be sublane-aligned for the row-merge reshape"

    B_blk = _pick_batch_block(N, H)

    # NCHW -> (N, H, W*C) lane-dense rows; in a full network keep activations in
    # this layout across consecutive blocks so the transposes happen once per model.
    x_rows = jnp.transpose(x_nchw, (0, 2, 3, 1)).reshape(N, H, WC)
    x_rows = x_rows.astype(jnp.bfloat16)   # MXU uses bf16 at DEFAULT precision anyway

    out_rows = pl.pallas_call(
        _basic_block_kernel,
        out_shape=jax.ShapeDtypeStruct((N, H, WC), jnp.float32),
        grid_spec=pltpu.PrefetchScalarGridSpec(
            num_scalar_prefetch=0,
            grid=(N // B_blk,),
            in_specs=[
                pl.BlockSpec((B_blk, H, WC), lambda n: (n, 0, 0)),
                # Grid-invariant operands: constant index maps -> fetched once.
                pl.BlockSpec((3 * WC, WC), lambda n: (0, 0)),
                pl.BlockSpec((1, WC), lambda n: (0, 0)),
                pl.BlockSpec((3 * WC, WC), lambda n: (0, 0)),
                pl.BlockSpec((1, WC), lambda n: (0, 0)),
            ],
            out_specs=pl.BlockSpec((B_blk, H, WC), lambda n: (n, 0, 0)),
            scratch_shapes=[pltpu.VMEM((B_blk, H + 2, WC), jnp.float32)],
        ),
        compiler_params=pltpu.CompilerParams(
            dimension_semantics=("parallel",),
            vmem_limit_bytes=32 * 1024 * 1024),
    )(x_rows, prep["t1"], prep["b1"], prep["t2"], prep["b2"])

    # (N, H, W*C) -> NHWC -> NCHW to match the PyTorch output layout.
    return jnp.transpose(out_rows.reshape(N, H, W, C), (0, 3, 1, 2))


# --------------------------------------------------------------------------- #
# Pure-JAX reference (lax.conv) for correctness checking
# --------------------------------------------------------------------------- #
def _reference_forward(x_nchw, params):
    def conv(x, w):  # x: NCHW, w: OIHW
        return jax.lax.conv_general_dilated(
            x, w, window_strides=(1, 1), padding=((1, 1), (1, 1)),
            dimension_numbers=("NCHW", "OIHW", "NCHW"))

    def bn(x, g, b, m, v, eps=1e-5):
        return (g[None, :, None, None] * (x - m[None, :, None, None])
                / jnp.sqrt(v[None, :, None, None] + eps) + b[None, :, None, None])

    out = conv(x_nchw, params["conv1_w"])
    out = bn(out, params["bn1_gamma"], params["bn1_beta"],
             params["bn1_mean"], params["bn1_var"])
    out = jnp.maximum(out, 0.0)
    out = conv(out, params["conv2_w"])
    out = bn(out, params["bn2_gamma"], params["bn2_beta"],
             params["bn2_mean"], params["bn2_var"])
    return jnp.maximum(out + x_nchw, 0.0)


def _init_params(key, inplanes, planes):
    ks = jax.random.split(key, 8)
    return {
        # conv weights in PyTorch OIHW layout: (out, in, 3, 3)
        "conv1_w": 0.1 * jax.random.normal(ks[0], (planes, inplanes, 3, 3), jnp.float32),
        "conv2_w": 0.1 * jax.random.normal(ks[1], (planes, planes, 3, 3), jnp.float32),
        "bn1_gamma": 1.0 + 0.1 * jax.random.normal(ks[2], (planes,), jnp.float32),
        "bn1_beta": 0.1 * jax.random.normal(ks[3], (planes,), jnp.float32),
        "bn1_mean": 0.05 * jax.random.normal(ks[4], (planes,), jnp.float32),
        "bn1_var": 1.0 + 0.1 * jnp.abs(jax.random.normal(ks[5], (planes,), jnp.float32)),
        "bn2_gamma": 1.0 + 0.1 * jax.random.normal(ks[6], (planes,), jnp.float32),
        "bn2_beta": 0.1 * jax.random.normal(ks[7], (planes,), jnp.float32),
        "bn2_mean": jnp.zeros((planes,), jnp.float32),
        "bn2_var": jnp.ones((planes,), jnp.float32),
    }


if __name__ == "__main__":
    # inplanes == planes, stride=1, no downsample; W*C = 128 -> lane-dense rows.
    # B_blk = 8 -> M = 128 MXU rows per matmul, grid = (2,) for megacore coverage.
    N, C, H, W = 16, 8, 16, 16
    key = jax.random.PRNGKey(0)
    kx, kp = jax.random.split(key)
    x = jax.random.normal(kx, (N, C, H, W), jnp.float32)
    params = _init_params(kp, C, C)

    prep = prepare_basic_block(params, W)   # hoisted: once per weight set
    out = jax.block_until_ready(basic_block_forward(x, prep))
    ref = jax.block_until_ready(_reference_forward(x, params))

    assert out.shape == (N, C, H, W)
    max_err = float(jnp.max(jnp.abs(out - ref)))
    # bf16 MXU operands (explicit here, implicit in XLA's DEFAULT-precision conv)
    # bound agreement to a few 1e-3 rms; use precision=HIGHEST for tighter parity.
    assert jnp.allclose(out, ref, atol=5e-2, rtol=5e-2), max_err
    print("KERNEL_OK")
</pallas_src>

<mosaic_0001>
module attributes {stable_mosaic.version = 11 : i64} {
  func.func @_basic_block_kernel(%arg0: i32, %arg1: memref<8x16x128xbf16, #tpu.memory_space<vmem>>, %arg2: memref<384x128xbf16, #tpu.memory_space<vmem>>, %arg3: memref<1x128xf32, #tpu.memory_space<vmem>>, %arg4: memref<384x128xbf16, #tpu.memory_space<vmem>>, %arg5: memref<1x128xf32, #tpu.memory_space<vmem>>, %arg6: memref<8x16x128xf32, #tpu.memory_space<vmem>>, %arg7: memref<8x18x128xf32, #tpu.memory_space<vmem>>) attributes {dimension_semantics = [#tpu.dimension_semantics<parallel>], iteration_bounds = array<i64: 2>, scalar_prefetch = 0 : i64, scratch_operands = 1 : i64, tpu.core_type = #tpu.core_type<tc>, window_params = [{transform_indices = @transform_0, window_bounds = array<i64: 8, 16, 128>}, {pipeline_mode = #tpu.pipeline_mode<synchronous>, transform_indices = @transform_1, window_bounds = array<i64: 384, 128>}, {pipeline_mode = #tpu.pipeline_mode<synchronous>, transform_indices = @transform_2, window_bounds = array<i64: 1, 128>}, {pipeline_mode = #tpu.pipeline_mode<synchronous>, transform_indices = @transform_3, window_bounds = array<i64: 384, 128>}, {pipeline_mode = #tpu.pipeline_mode<synchronous>, transform_indices = @transform_4, window_bounds = array<i64: 1, 128>}, {transform_indices = @transform_5, window_bounds = array<i64: 8, 16, 128>}]} {
    %cst = arith.constant 0.000000e+00 : f32
    %0 = vector.broadcast %cst : f32 to vector<8x1x128xf32>
    %c0 = arith.constant 0 : index
    %c0_0 = arith.constant 0 : index
    %c0_1 = arith.constant 0 : index
    %1 = vector.load %arg7[%c0, %c0_0, %c0_1] : memref<8x18x128xf32, #tpu.memory_space<vmem>>, vector<8x1x128xf32>
    tpu.vector_store %arg7[%c0, %c0_0, %c0_1], %0 {strides = array<i32>} : memref<8x18x128xf32, #tpu.memory_space<vmem>>, vector<8x1x128xf32>,
    %c0_2 = arith.constant 0 : index
    %c17 = arith.constant 17 : index
    %c0_3 = arith.constant 0 : index
    %2 = vector.load %arg7[%c0_2, %c17, %c0_3] : memref<8x18x128xf32, #tpu.memory_space<vmem>>, vector<8x1x128xf32>
    tpu.vector_store %arg7[%c0_2, %c17, %c0_3], %0 {strides = array<i32>} : memref<8x18x128xf32, #tpu.memory_space<vmem>>, vector<8x1x128xf32>,
    %c0_4 = arith.constant 0 : index
    %c0_5 = arith.constant 0 : index
    %c0_6 = arith.constant 0 : index
    %3 = vector.load %arg1[%c0_4, %c0_5, %c0_6] : memref<8x16x128xbf16, #tpu.memory_space<vmem>>, vector<8x16x128xbf16>
    %4 = arith.extf %3 : vector<8x16x128xbf16> to vector<8x16x128xf32>
    %c0_7 = arith.constant 0 : index
    %c1 = arith.constant 1 : index
    %c0_8 = arith.constant 0 : index
    %5 = vector.load %arg7[%c0_7, %c1, %c0_8] : memref<8x18x128xf32, #tpu.memory_space<vmem>>, vector<8x16x128xf32>
    tpu.vector_store %arg7[%c0_7, %c1, %c0_8], %4 {strides = array<i32>} : memref<8x18x128xf32, #tpu.memory_space<vmem>>, vector<8x16x128xf32>,
    %c0_9 = arith.constant 0 : index
    %c0_10 = arith.constant 0 : index
    %c0_11 = arith.constant 0 : index
    %6 = vector.load %arg7[%c0_9, %c0_10, %c0_11] : memref<8x18x128xf32, #tpu.memory_space<vmem>>, vector<8x16x128xf32>
    %c0_12 = arith.constant 0 : index
    %c2 = arith.constant 2 : index
    %c0_13 = arith.constant 0 : index
    %7 = vector.load %arg7[%c0_12, %c2, %c0_13] : memref<8x18x128xf32, #tpu.memory_space<vmem>>, vector<8x16x128xf32>
    %8 = tpu.concatenate %6, %4, %7 in 2 : vector<8x16x128xf32>, vector<8x16x128xf32>, vector<8x16x128xf32> -> vector<8x16x384xf32>
    %9 = vector.shape_cast %8 : vector<8x16x384xf32> to vector<128x384xf32>
    %10 = arith.truncf %9 : vector<128x384xf32> to vector<128x384xbf16>
    %c0_14 = arith.constant 0 : index
    %c0_15 = arith.constant 0 : index
    %11 = vector.load %arg2[%c0_14, %c0_15] : memref<384x128xbf16, #tpu.memory_space<vmem>>, vector<384x128xbf16>
    %cst_16 = arith.constant dense<0.000000e+00> : vector<128x128xf32>
    %12 = tpu.matmul %10, %11, %cst_16 {dimension_numbers = #tpu.dot_dimension_numbers<[1], [0], [0], [1], [0, 0, 1, 1], [], []>} : vector<128x384xbf16>, vector<384x128xbf16>, vector<128x128xf32> -> vector<128x128xf32>
    %c0_17 = arith.constant 0 : index
    %c0_18 = arith.constant 0 : index
    %13 = vector.load %arg3[%c0_17, %c0_18] : memref<1x128xf32, #tpu.memory_space<vmem>>, vector<1x128xf32>
    %14 = vector.broadcast %13 : vector<1x128xf32> to vector<128x128xf32>
    %15 = arith.addf %12, %14 : vector<128x128xf32>
    %cst_19 = arith.constant 0.000000e+00 : f32
    %16 = vector.broadcast %cst_19 : f32 to vector<128x128xf32>
    %17 = arith.maximumf %15, %16 : vector<128x128xf32>
    %18 = vector.shape_cast %17 : vector<128x128xf32> to vector<8x16x128xf32>
    %c0_20 = arith.constant 0 : index
    %c1_21 = arith.constant 1 : index
    %c0_22 = arith.constant 0 : index
    %19 = vector.load %arg7[%c0_20, %c1_21, %c0_22] : memref<8x18x128xf32, #tpu.memory_space<vmem>>, vector<8x16x128xf32>
    tpu.vector_store %arg7[%c0_20, %c1_21, %c0_22], %18 {strides = array<i32>} : memref<8x18x128xf32, #tpu.memory_space<vmem>>, vector<8x16x128xf32>,
    %c0_23 = arith.constant 0 : index
    %c0_24 = arith.constant 0 : index
    %c0_25 = arith.constant 0 : index
    %20 = vector.load %arg7[%c0_23, %c0_24, %c0_25] : memref<8x18x128xf32, #tpu.memory_space<vmem>>, vector<8x16x128xf32>
    %c0_26 = arith.constant 0 : index
    %c2_27 = arith.constant 2 : index
    %c0_28 = arith.constant 0 : index
    %21 = vector.load %arg7[%c0_26, %c2_27, %c0_28] : memref<8x18x128xf32, #tpu.memory_space<vmem>>, vector<8x16x128xf32>
    %22 = tpu.concatenate %20, %18, %21 in 2 : vector<8x16x128xf32>, vector<8x16x128xf32>, vector<8x16x128xf32> -> vector<8x16x384xf32>
    %23 = vector.shape_cast %22 : vector<8x16x384xf32> to vector<128x384xf32>
    %24 = arith.truncf %23 : vector<128x384xf32> to vector<128x384xbf16>
    %c0_29 = arith.constant 0 : index
    %c0_30 = arith.constant 0 : index
    %25 = vector.load %arg4[%c0_29, %c0_30] : memref<384x128xbf16, #tpu.memory_space<vmem>>, vector<384x128xbf16>
    %cst_31 = arith.constant dense<0.000000e+00> : vector<128x128xf32>
    %26 = tpu.matmul %24, %25, %cst_31 {dimension_numbers = #tpu.dot_dimension_numbers<[1], [0], [0], [1], [0, 0, 1, 1], [], []>} : vector<128x384xbf16>, vector<384x128xbf16>, vector<128x128xf32> -> vector<128x128xf32>
    %c0_32 = arith.constant 0 : index
    %c0_33 = arith.constant 0 : index
    %27 = vector.load %arg5[%c0_32, %c0_33] : memref<1x128xf32, #tpu.memory_space<vmem>>, vector<1x128xf32>
    %28 = vector.broadcast %27 : vector<1x128xf32> to vector<128x128xf32>
    %29 = arith.addf %26, %28 : vector<128x128xf32>
    %30 = vector.shape_cast %4 : vector<8x16x128xf32> to vector<128x128xf32>
    %31 = arith.addf %29, %30 : vector<128x128xf32>
    %cst_34 = arith.constant 0.000000e+00 : f32
    %32 = vector.broadcast %cst_34 : f32 to vector<128x128xf32>
    %33 = arith.maximumf %31, %32 : vector<128x128xf32>
    %34 = vector.shape_cast %33 : vector<128x128xf32> to vector<8x16x128xf32>
    %c0_35 = arith.constant 0 : index
    %c0_36 = arith.constant 0 : index
    %c0_37 = arith.constant 0 : index
    %35 = vector.load %arg6[%c0_35, %c0_36, %c0_37] : memref<8x16x128xf32, #tpu.memory_space<vmem>>, vector<8x16x128xf32>
    tpu.vector_store %arg6[%c0_35, %c0_36, %c0_37], %34 {strides = array<i32>} : memref<8x16x128xf32, #tpu.memory_space<vmem>>, vector<8x16x128xf32>,
    return
  }
  func.func @transform_0(%arg0: i32) -> (i32, i32, i32) {
    %c0_i32 = arith.constant 0 : i32
    %c0_i32_0 = arith.constant 0 : i32
    %c0_i32_1 = arith.constant 0 : i32
    return %arg0, %c0_i32, %c0_i32_0 : i32, i32, i32
  }
  func.func @transform_1(%arg0: i32) -> (i32, i32) {
    %c0_i32 = arith.constant 0 : i32
    %c0_i32_0 = arith.constant 0 : i32
    %c0_i32_1 = arith.constant 0 : i32
    return %c0_i32, %c0_i32_0 : i32, i32
  }
  func.func @transform_2(%arg0: i32) -> (i32, i32) {
    %c0_i32 = arith.constant 0 : i32
    %c0_i32_0 = arith.constant 0 : i32
    %c0_i32_1 = arith.constant 0 : i32
    return %c0_i32, %c0_i32_0 : i32, i32
  }
  func.func @transform_3(%arg0: i32) -> (i32, i32) {
    %c0_i32 = arith.constant 0 : i32
    %c0_i32_0 = arith.constant 0 : i32
    %c0_i32_1 = arith.constant 0 : i32
    return %c0_i32, %c0_i32_0 : i32, i32
  }
  func.func @transform_4(%arg0: i32) -> (i32, i32) {
    %c0_i32 = arith.constant 0 : i32
    %c0_i32_0 = arith.constant 0 : i32
    %c0_i32_1 = arith.constant 0 : i32
    return %c0_i32, %c0_i32_0 : i32, i32
  }
  func.func @transform_5(%arg0: i32) -> (i32, i32, i32) {
    %c0_i32 = arith.constant 0 : i32
    %c0_i32_0 = arith.constant 0 : i32
    %c0_i32_1 = arith.constant 0 : i32
    return %arg0, %c0_i32, %c0_i32_0 : i32, i32, i32
  }
}

</mosaic_0001>

<bundles_post_ra>
// kernel: tpu_custom_call.1
= control target key start
LH: loop header
LB: loop body
LE: loop exit
PB: predicated region body
PF: predicated region fallthrough
CT: control target
= control target key end

     0   :  { %10 = vsyncpa [#allocation4], 0  ;;  %s2504_s0 = inlined_call_operand.hbm [shape: bf16[16,16,128], index: 0, kind: input, shape index: {}]   ;;  %s2505_s1 = inlined_call_operand.hbm [shape: bf16[384,128], index: 1, kind: input, shape index: {}]   ;;  %s2506_s2 = inlined_call_operand.vmem [shape: f32[1,128], index: 2, kind: input, shape index: {}]   ;;  %s2507_s3 = inlined_call_operand.hbm [shape: bf16[384,128], index: 3, kind: input, shape index: {}]   ;;  %s2508_s4 = inlined_call_operand.vmem [shape: f32[1,128], index: 4, kind: input, shape index: {}]   ;;  %s2509_s5 = inlined_call_operand.hbm [shape: f32[16,16,128], index: 5, kind: output, shape index: {}]  }
   0x1   :  { %12 = vsyncpa [#allocation4 + $0x1], 0 }
   0x2   :  { %13 = vsyncpa [#allocation7], 0 }
   0x3   :  { %14 = vsyncpa [#allocation5], 0 }
   0x4   :  { %16 = vsyncpa [#allocation5 + $0x1], 0  ;;  %s2064_s18 = smov 0   ;;  %s2066_s19 = smov 0  }
   0x5   :  { %s2068_s20 = smov 0   ;;  %s2070_s21 = smov 0  }
   0x6 LB: > { %s2085_s22 = sadd.s32 4294967295, %s2023_s21   ;;  %s1425_s23 = sadd.s32 4294967294, %s2023_s21   ;;  %s2023_s21 = sphi %s2070_s21, %s2529_s21   ;;  %s2019_s20 = sphi %s2068_s20, %s2528_s20   ;;  %s2015_s19 = sphi %s2066_s19, %s2527_s19   ;;  %s2011_s18 = sphi %s2064_s18, %s2526_s18  }
   0x7   : > { %p42_p0 = scmp.ne.s32.totalorder %s2015_s19, %s2011_s18  ;;  %p2510_p1 = scmp.eq.s32.totalorder %s2085_s22, 0 }
   0x8   : > { %p156_p3 = scmp.eq.s32.totalorder %s1425_s23, 1  ;;  %p1426_p5 = scmp.ge.s32.totalorder %s2023_s21, 1 }
   0x9   : > { %p2094_p4 = por %p2510_p1, %p42_p0  ;;  %p163_p7 = scmp.lt.s32.totalorder %s2023_s21, 3 }
   0xa   : > { %p2099_p6 = por %p156_p3, %p42_p0  ;;  %s2025_s27 = smov [#allocation6]  }
   0xb   : > { %s2513_s24 = scalar_select %p2094_p4, 1, 0 }
   0xc   : > { %s2514_s25 = scalar_select %p2099_p6, 1, 0 }
   0xd   : > { %p2104_p8 = pnand %p1426_p5, %p163_p7  ;;  %s175_s28 = sshll.u32 %s2025_s27, 4  ;;  %s2108_s28 = int_to_ptr.vmem [resolvable:$true] %s175_s28 }
   0xe   : > { %s2026_s30 = smov [#allocation8]   ;;  %s1867_s9 = scalar_lea.hbm %s2505_s1, 3072 }
   0xf   : > { %p1743_p9 = pneg %p2104_p8  ;;  %s191_s6 = sshll.u32 %s2026_s30, 4  ;;  %s2119_s6 = int_to_ptr.vmem [resolvable:$true] %s191_s6 }
  0x10   : > { %p1868_p12 = scmp.ne.s32.totalorder %s2505_s1, %s1867_s9  ;;  %p1874_p5 = scmp.lt.u32.totalorder %s1867_s9, %s2505_s1 }
  0x11   : > { %p2115_p11 = pnand %p1743_p9, %p2510_p1 }
  0x13   : > { %p1869_p13 = pneg %p2115_p11 }
  0x15   : > { %p1870_p0 = pnand %p1869_p13, %p1868_p12 }
  0x17   : > { %p1871_p3 = pneg %p1870_p0 }
  0x19   : > { %p1876_p7 = pnand %p1874_p5, %p1871_p3 }
  0x1b   : > { %1879 = shalt.err (!%p1876_p7)
}
  0x1c   : > { %s1880_s14 = scalar_lea.vmem %s2108_s28, 3072  ;;  %p1888_p2 = scmp.lt.s32.totalorder %s2108_s28, %s2108_s28 }
  0x1d   : > { %p1881_p9 = scmp.ne.s32.totalorder %s2108_s28, %s1880_s14  ;;  %p1889_p12 = scmp.lt.s32.totalorder %s1880_s14, %s1880_s14 }
  0x1f   : > { %p1883_p10 = pnand %p1881_p9, %p1869_p13  ;;  %p1890_p0 = por %p1889_p12, %p1888_p2 }
  0x21   : > { %p1884_p1 = pneg %p1883_p10 }
  0x23   : > { %p1891_p6 = pnand %p1890_p0, %p1884_p1 }
  0x25   : > { %1894 = shalt.err (!%p1891_p6)
}
  0x26   : > { %s2027_s15 = smov 64   ;;  %s2028_s16 = smov 4  }
  0x27   : > { %1746 = dma.hbm_to_vmem [thread:$0]  (!%p2115_p11), %s2505_s1, 3072, %s2108_s28, [#allocation7], %s2027_s15, %s2027_s15, %s2028_s16  }
  0x28   : > { %s1895_s7 = scalar_lea.hbm %s2507_s3, 3072 }
  0x29   : > { %p1896_p1 = scmp.ne.s32.totalorder %s2507_s3, %s1895_s7  ;;  %p1902_p10 = scmp.lt.u32.totalorder %s1895_s7, %s2507_s3 }
  0x2b   : > { %p1898_p2 = pnand %p1896_p1, %p1869_p13 }
  0x2d   : > { %p1899_p6 = pneg %p1898_p2 }
  0x2f   : > { %p1904_p3 = pnand %p1902_p10, %p1899_p6 }
  0x31   : > { %1907 = shalt.err (!%p1904_p3)
}
  0x32   : > { %s1908_s28 = scalar_lea.vmem %s2119_s6, 3072  ;;  %p1916_p12 = scmp.lt.s32.totalorder %s2119_s6, %s2119_s6 }
  0x33   : > { %p1909_p5 = scmp.ne.s32.totalorder %s2119_s6, %s1908_s28  ;;  %p1917_p0 = scmp.lt.s32.totalorder %s1908_s28, %s1908_s28 }
  0x35   : > { %p1911_p7 = pnand %p1909_p5, %p1869_p13  ;;  %p1918_p1 = por %p1917_p0, %p1916_p12 }
  0x37   : > { %p1912_p9 = pneg %p1911_p7 }
  0x39   : > { %p1919_p2 = pnand %p1918_p1, %p1912_p9 }
  0x3b   : > { %1922 = shalt.err (!%p1919_p2)
}
  0x3c   : > { %1749 = dma.hbm_to_vmem [thread:$0]  (!%p2115_p11), %s2507_s3, 3072, %s2119_s6, [#allocation7], %s2027_s15, %s2027_s15, %s2028_s16  }
  0x3d   : > { %s2180_s29 = sadd.s32 1, %s2023_s21   ;;  %s29_s14 = sadd.s32 1, %s2019_s20 }
  0x3e   : > { %s26_s17 = ssub.s32 %s2023_s21, %s2180_s29  ;;  %p36_p13 = scmp.ne.s32.totalorder %s2019_s20, %s2015_s19 }
  0x3f   : > { %p27_p6 = scmp.eq.s32.totalorder %s26_s17, 0  ;;  %p37_p10 = scmp.eq.s32.totalorder %s2023_s21, 0 }
  0x40   : > { %p2517_p3 = scmp.eq.s32.totalorder %s2085_s22, 1  ;;  %p1760_p7 = scmp.lt.s32.totalorder %s2023_s21, 2 }
  0x41   : > { %s2196_s27 = scalar_select %p27_p6, %s2019_s20, %s29_s14  }
  0x42   : > { %p2190_p5 = por %p2517_p3, %p36_p13  ;;  %p38_p9 = por %p37_p10, %p36_p13 }
  0x43   : > { %s208_s30 = sand.u32 1, %s2019_s20   ;;  %s1504_s6 = sshll.u32 %s2023_s21, 10 }
  0x44   : > { %s2518_s23 = scalar_select %p2190_p5, 1, 0 }
  0x45   : > { %s1430_s7 = sshll.u32 %s208_s30, 6  ;;  %s2203_s10 = scalar_lea.hbm %s2504_s0, %s1504_s6 }
  0x46   : > { %s212_s11 = scalar_lea.vmem [#allocation3], %s1430_s7  ;;  %p2207_p11 = pnand %p1760_p7, %p38_p9 }
  0x47   : > { %s220_s28 = sshll.u32 %s212_s11, 4  ;;  %s2211_s13 = scalar_lea.sflag [#allocation4], %s208_s30  ;;  %s2205_s28 = int_to_ptr.vmem [resolvable:$true] %s220_s28 }
  0x48   : > { %s1923_s14 = scalar_lea.hbm %s2203_s10, 1024  ;;  %p1925_p0 = pneg %p2207_p11 }
  0x49   : > { %p1924_p12 = scmp.ne.s32.totalorder %s2203_s10, %s1923_s14  ;;  %s1928_s6 = scalar_lea.hbm %s2504_s0, 2048 }
  0x4a   : > { %p1929_p13 = scmp.lt.u32.totalorder %s2203_s10, %s2504_s0  ;;  %p1930_p6 = scmp.lt.u32.totalorder %s1928_s6, %s1923_s14 }
  0x4b   : > { %p1926_p1 = pnand %p1925_p0, %p1924_p12  ;;  %p1932_p3 = scmp.lt.u32.totalorder %s1923_s14, %s2203_s10 }
  0x4c   : > { %p1931_p10 = por %p1930_p6, %p1929_p13 }
  0x4d   : > { %p1927_p2 = pneg %p1926_p1 }
  0x4e   : > { %p1933_p7 = por %p1932_p3, %p1931_p10 }
  0x50   : > { %p1934_p9 = pnand %p1933_p7, %p1927_p2 }
  0x52   : > { %1937 = shalt.err (!%p1934_p9)
}
  0x53   : > { %s1938_s30 = scalar_lea.vmem %s2205_s28, 1024  ;;  %s2029_s11 = smov [#allocation3]  }
  0x54   : > { %p1939_p12 = scmp.ne.s32.totalorder %s2205_s28, %s1938_s30  ;;  %s1943_s17 = sshll.u32 %s2029_s11, 4  ;;  %s1944_s17 = int_to_ptr.vmem [resolvable:$false] %s1943_s17 }
  0x55   : > { %s1945_s7 = scalar_lea.vmem %s1944_s17, 2048  ;;  %p1946_p4 = scmp.lt.s32.totalorder %s2205_s28, %s1944_s17 }
  0x56   : > { %p1941_p1 = pnand %p1939_p12, %p1925_p0  ;;  %p1947_p13 = scmp.lt.s32.totalorder %s1945_s7, %s1938_s30 }
  0x58   : > { %p1942_p5 = pneg %p1941_p1  ;;  %p1948_p6 = por %p1947_p13, %p1946_p4 }
  0x5a   : > { %p1949_p10 = pnand %p1948_p6, %p1942_p5 }
  0x5c   : > { %1952 = shalt.err (!%p1949_p10)
}
  0x5d   : > { %1753 = dma.hbm_to_vmem [thread:$0]  (!%p2207_p11), %s2203_s10, 1024, %s2205_s28, %s2211_s13, %s2027_s15, %s2027_s15, %s2028_s16  }
  0x5e   : > { %232 = sbr.rel (%p2104_p8) target bundleno = 667 (0x29b), region = 40  ;;  %s2245_s14 = sand.u32 (!%p2104_p8), 1, %s2015_s19  }
  0x5f   : > { %s1435_s6 = sshll.u32 (!%p2104_p8), %s2245_s14, 6  ;;  %s235_s8 = scalar_lea.sflag (!%p2104_p8), [#allocation4], %s2245_s14 }
  0x60   : > { %s2249_s9 = scalar_lea.vmem (!%p2104_p8), [#allocation3], %s1435_s6  ;;  %p2520_p4 = scmp.ne.s32.totalorder (!%p2104_p8), %s2513_s24, 0 }
  0x65   : > { %1998 = dma.done.wait (%p2520_p4), %s235_s8, 1024  }
  0x66   : > { %2000 = vsyncadd (%p2520_p4), %s235_s8, 4294966272  ;;  %p2521_p5 = scmp.eq.s32.totalorder %s2085_s22, 0 }
  0x68   : > { %2002 = dma.done.wait (%p2521_p5), [#allocation7], 6144   ;;  %p2522_p8 = pmov %p2521_p5 }
  0x69   : > { %v2030_v0 = vmov 0.0   ;;  %v1803_v1 = vld [vmem:[#allocation6 + $0x40] sm:$0xff]   ;;  %v1806_v4 = vld [vmem:[#allocation6 + $0x48] sm:$0xff]   ;;  %v1809_v7 = vld [vmem:[#allocation6 + $0x50] sm:$0xff]   ;;  %s1438_s10 = sshll.u32 %s2245_s14, 7  ;;  %s1506_s12 = sshll.u32 %s2085_s22, 11 }
  0x6a   : > { %2004 = vsyncadd (%p2522_p8), [#allocation7], 4294961152  ;;  %276 = vst [vmem:[#allocation2] sm:$0x1] %v2030_v0  ;;  %v1804_v2 = vld [vmem:[#allocation6] sm:$0xff]   ;;  %1507 = vmatprep.subr.bf16.mxu0 %v1803_v1  ;;  %v1807_v5 = vld [vmem:[#allocation6 + $0x8] sm:$0xff]   ;;  %s2456_s17 = scalar_lea.hbm %s2509_s5, %s1506_s12 }
  0x6b   : > { %277 = vst [vmem:[#allocation2 + $0x18] sm:$0x1] %v2030_v0  ;;  %278 = vst [vmem:[#allocation2 + $0x30] sm:$0x1] %v2030_v0  ;;  %v1805_v3 = vld [vmem:[#allocation6 + $0x80] sm:$0xff]   ;;  %1508 = vmatpush3.bf16.msra.mxu0 %v1804_v2  ;;  %v1808_v6 = vld [vmem:[#allocation6 + $0x88] sm:$0xff]  }
  0x6c   : > { %279 = vst [vmem:[#allocation2 + $0x48] sm:$0x1] %v2030_v0  ;;  %280 = vst [vmem:[#allocation2 + $0x60] sm:$0x1] %v2030_v0  ;;  %1667 = vmatprep.subr.bf16.mxu1 %v1805_v3  ;;  %1509 = vmatprep.subr.bf16.mxu0 %v1806_v4  ;;  %v1810_v8 = vld [vmem:[#allocation6 + $0x10] sm:$0xff]   ;;  %v1812_v10 = vld [vmem:[#allocation6 + $0x58] sm:$0xff]  }
  0x6d   : > { %281 = vst [vmem:[#allocation2 + $0x78] sm:$0x1] %v2030_v0  ;;  %282 = vst [vmem:[#allocation2 + $0x90] sm:$0x1] %v2030_v0  ;;  %1668 = vmatpush3.bf16.msra.mxu1 %v1805_v3  ;;  %v1811_v9 = vld [vmem:[#allocation6 + $0x90] sm:$0xff]   ;;  %v1813_v11 = vld [vmem:[#allocation6 + $0x18] sm:$0xff]  }
  0x6e   : > { %283 = vst [vmem:[#allocation2 + $0xa8] sm:$0x1] %v2030_v0  ;;  %284 = vst [vmem:[#allocation2 + $0x11] sm:$0x1] %v2030_v0  ;;  %1669 = vmatprep.subr.bf16.mxu1 %v1808_v6  ;;  %v1814_v12 = vld [vmem:[#allocation6 + $0x98] sm:$0xff]   ;;  %v1815_v13 = vld [vmem:[#allocation6 + $0x60] sm:$0xff]  }
  0x6f   : > { %285 = vst [vmem:[#allocation2 + $0x29] sm:$0x1] %v2030_v0  ;;  %286 = vst [vmem:[#allocation2 + $0x41] sm:$0x1] %v2030_v0  ;;  %1510 = vmatpush3.bf16.msra.mxu0 %v1807_v5  ;;  %v1817_v14 = vld [vmem:[#allocation6 + $0xa0] sm:$0xff]   ;;  %v1818_v16 = vld [vmem:[#allocation6 + $0x68] sm:$0xff]  }
  0x70   : > { %287 = vst [vmem:[#allocation2 + $0x59] sm:$0x1] %v2030_v0  ;;  %288 = vst [vmem:[#allocation2 + $0x71] sm:$0x1] %v2030_v0  ;;  %1511 = vmatprep.subr.bf16.mxu0 %v1809_v7  ;;  %v1816_v15 = vld [vmem:[#allocation6 + $0x20] sm:$0xff]   ;;  %v1820_v17 = vld [vmem:[#allocation6 + $0xa8] sm:$0xff]  }
  0x71   : > { %289 = vst [vmem:[#allocation2 + $0x89] sm:$0x1] %v2030_v0  ;;  %290 = vst [vmem:[#allocation2 + $0xa1] sm:$0x1] %v2030_v0  ;;  %1670 = vmatpush3.bf16.msra.mxu1 %v1808_v6  ;;  %v1819_v18 = vld [vmem:[#allocation6 + $0x28] sm:$0xff]   ;;  %v1821_v19 = vld [vmem:[#allocation6 + $0x70] sm:$0xff]  }
  0x72   : > { %291 = vst [vmem:[#allocation2 + $0xb9] sm:$0x1] %v2030_v0  ;;  %1671 = vmatprep.subr.bf16.mxu1 %v1811_v9  ;;  %v1822_v20 = vld [vmem:[#allocation6 + $0x30] sm:$0xff]   ;;  %v1824_v22 = vld [vmem:[#allocation6 + $0x78] sm:$0xff]   ;;  %v2260_v23 = vld [vmem:[%s2249_s9] sm:$0xff]   ;;  %s2397_s28 = scalar_lea.vmem [#allocation9], %s1438_s10 }
  0x73   : > { %1512 = vmatpush3.bf16.msra.mxu0 %v1810_v8  ;;  %v1823_v21 = vld [vmem:[#allocation6 + $0xb0] sm:$0xff]   ;;  %v2263_v24 = vld [vmem:[%s2249_s9 + $0x8] sm:$0xff]   ;;  %v1825_v26 = vld [vmem:[#allocation6 + $0x38] sm:$0xff]   ;;  %v308_v27 = vunpack.c.l.bf16 %v2260_v23  ;;  %v309_v28 = vunpack.c.h.bf16 %v2260_v23  ;;  %627 = vmatprep.mubr.bf16.mxu0 %v2260_v23  ;;  %s1333_s13 = sshll.u32 %s2397_s28, 4  ;;  %s1319_s22 = scalar_lea.sflag [#allocation5], %s2245_s14  ;;  %s2458_s13 = int_to_ptr.vmem [resolvable:$true] %s1333_s13 }
  0x74   : > { %1513 = vmatprep.subr.bf16.mxu0 %v1812_v10  ;;  %v2266_v25 = vld [vmem:[%s2249_s9 + $0x10] sm:$0xff]   ;;  %v310_v29 = vunpack.c.l.bf16 %v2263_v24  ;;  %v2272_v30 = vld [vmem:[%s2249_s9 + $0x18] sm:$0xff]   ;;  %v2275_v31 = vld [vmem:[%s2249_s9 + $0x20] sm:$0xff]   ;;  %v311_v34 = vunpack.c.h.bf16 %v2263_v24  ;;  %s1953_s7 = scalar_lea.vmem %s2458_s13, 2048  ;;  %p2523_p0 = scmp.ne.s32.totalorder %s2518_s23, 0 }
  0x75   : > { %1672 = vmatpush3.bf16.msra.mxu1 %v1811_v9  ;;  %v2278_v32 = vld [vmem:[%s2249_s9 + $0x28] sm:$0xff]   ;;  %v1826_v33 = vld [vmem:[#allocation6 + $0xb8] sm:$0xff]   ;;  %v312_v35 = vunpack.c.l.bf16 %v2266_v25  ;;  %v313_v36 = vunpack.c.h.bf16 %v2266_v25  ;;  %v2284_v37 = vld [vmem:[%s2249_s9 + $0x30] sm:$0xff]   ;;  %324 = vst [vmem:[#allocation2 + $0x1] sm:$0xff] %v308_v27  ;;  %v314_v38 = vunpack.c.l.bf16 %v2272_v30  ;;  %v315_v39 = vunpack.c.h.bf16 %v2272_v30  ;;  %p1954_p11 = scmp.ne.s32.totalorder %s2458_s13, %s1953_s7  ;;  %s2031_s6 = smov [#allocation9]  }
  0x76   : > { %1673 = vmatprep.subr.bf16.mxu1 %v1814_v12  ;;  %325 = vst [vmem:[#allocation2 + $0x9] sm:$0xff] %v309_v28  ;;  %326 = vst [vmem:[#allocation2 + $0x19] sm:$0xff] %v310_v29  ;;  %v2296_v40 = vld [vmem:[%s2249_s9 + $0x38] sm:$0xff]   ;;  %v316_v41 = vunpack.c.l.bf16 %v2275_v31  ;;  %v317_v42 = vunpack.c.h.bf16 %v2275_v31  ;;  %v318_v43 = vunpack.c.l.bf16 %v2278_v32  ;;  %v319_v44 = vunpack.c.h.bf16 %v2278_v32  ;;  %v1835_v47 = vld [vmem:[#allocation8 + $0x40] sm:$0xff]   ;;  %s1957_s8 = sshll.u32 %s2031_s6, 4  ;;  %s1958_s8 = int_to_ptr.vmem [resolvable:$false] %s1957_s8 }
  0x77   : > { %1514 = vmatpush3.bf16.msra.mxu0 %v1813_v11  ;;  %327 = vst [vmem:[#allocation2 + $0x21] sm:$0xff] %v311_v34  ;;  %328 = vst [vmem:[#allocation2 + $0x31] sm:$0xff] %v312_v35  ;;  %v320_v45 = vunpack.c.l.bf16 %v2284_v37  ;;  %v321_v46 = vunpack.c.h.bf16 %v2284_v37  ;;  %v322_v48 = vunpack.c.l.bf16 %v2296_v40  ;;  %v323_v49 = vunpack.c.h.bf16 %v2296_v40  ;;  %v1838_v50 = vld [vmem:[#allocation8 + $0x80] sm:$0xff]   ;;  %v1837_v63 = vld [vmem:[#allocation8 + $0x48] sm:$0xff]   ;;  %p1955_p2 = pnand %p1954_p11, %p2523_p0  ;;  %s1959_s9 = scalar_lea.vmem %s1958_s8, 4096 }
  0x78   : > { %1515 = vmatprep.subr.bf16.mxu0 %v1815_v13  ;;  %329 = vst [vmem:[#allocation2 + $0x39] sm:$0xff] %v313_v36  ;;  %330 = vst [vmem:[#allocation2 + $0x49] sm:$0xff] %v314_v38  ;;  %v1836_v60 = vld [vmem:[#allocation8] sm:$0xff]   ;;  %v1839_v5 = vld [vmem:[#allocation8 + $0x8] sm:$0xff]   ;;  %p1960_p7 = scmp.lt.s32.totalorder %s2458_s13, %s1958_s8  ;;  %p1961_p9 = scmp.lt.s32.totalorder %s1959_s9, %s1953_s7 }
  0x79   : > { %1674 = vmatpush3.bf16.msra.mxu1 %v1814_v12  ;;  %331 = vst [vmem:[#allocation2 + $0x51] sm:$0xff] %v315_v39  ;;  %332 = vst [vmem:[#allocation2 + $0x61] sm:$0xff] %v316_v41  ;;  %v1840_v9 = vld [vmem:[#allocation8 + $0x50] sm:$0xff]   ;;  %p1956_p3 = pneg %p1955_p2 }
  0x7a   : > { %1675 = vmatprep.subr.bf16.mxu1 %v1817_v14  ;;  %333 = vst [vmem:[#allocation2 + $0x69] sm:$0xff] %v317_v42  ;;  %334 = vst [vmem:[#allocation2 + $0x79] sm:$0xff] %v318_v43  ;;  %v1841_v11 = vld [vmem:[#allocation8 + $0x10] sm:$0xff]   ;;  %p1962_p12 = por %p1961_p9, %p1960_p7 }
  0x7b   : > { %1516 = vmatpush3.bf16.msra.mxu0 %v1816_v15  ;;  %335 = vst [vmem:[#allocation2 + $0x81] sm:$0xff] %v319_v44  ;;  %336 = vst [vmem:[#allocation2 + $0x91] sm:$0xff] %v320_v45 }
  0x7c   : > { %1517 = vmatprep.subr.bf16.mxu0 %v1818_v16  ;;  %337 = vst [vmem:[#allocation2 + $0x99] sm:$0xff] %v321_v46  ;;  %338 = vst [vmem:[#allocation2 + $0xa9] sm:$0xff] %v322_v48  ;;  %v340_v51 = vld [vmem:[#allocation2] sm:$0xff]  ;;  %p1963_p1 = pnand %p1962_p12, %p1956_p3 }
  0x7d   : > { %1676 = vmatpush3.bf16.msra.mxu1 %v1817_v14  ;;  %339 = vst [vmem:[#allocation2 + $0xb1] sm:$0xff] %v323_v49  ;;  %v341_v52 = vld [vmem:[#allocation2 + $0x8] sm:$0xff]  ;;  %v342_v0 = vld [vmem:[#allocation2 + $0x18] sm:$0xff] }
  0x7e   : > { %1677 = vmatprep.subr.bf16.mxu1 %v1820_v17  ;;  %v356_v53 = vld [vmem:[#allocation2 + $0x2] sm:$0xff]  ;;  %v372_v54 = vpack.c.bf16 %v341_v52, %v340_v51  ;;  %v357_v55 = vld [vmem:[#allocation2 + $0xa] sm:$0xff]  ;;  %v358_v56 = vld [vmem:[#allocation2 + $0x1a] sm:$0xff] }
  0x7f   : > { %1518 = vmatpush3.bf16.msra.mxu0 %v1819_v18  ;;  %v359_v57 = vld [vmem:[#allocation2 + $0x22] sm:$0xff]  ;;  %v374_v58 = vpack.c.bf16 %v357_v55, %v356_v53  ;;  %v360_v61 = vld [vmem:[#allocation2 + $0x32] sm:$0xff]  ;;  %v361_v62 = vld [vmem:[#allocation2 + $0x3a] sm:$0xff] }
  0x80   : > { %1519 = vmatprep.subr.bf16.mxu0 %v1821_v19  ;;  %v377_v59 = vpack.c.bf16 %v359_v57, %v358_v56  ;;  %v343_v1 = vld [vmem:[#allocation2 + $0x20] sm:$0xff]  ;;  %v380_v2 = vpack.c.bf16 %v361_v62, %v360_v61  ;;  %v362_v3 = vld [vmem:[#allocation2 + $0x4a] sm:$0xff]  ;;  %v363_v4 = vld [vmem:[#allocation2 + $0x52] sm:$0xff] }
  0x81   : > { %1678 = vmatpush3.bf16.msra.mxu1 %v1820_v17  ;;  %1683 = vmatprep.mubr.bf16.mxu1 %v374_v58  ;;  %v375_v6 = vpack.c.bf16 %v343_v1, %v342_v0  ;;  %v364_v7 = vld [vmem:[#allocation2 + $0x62] sm:$0xff]  ;;  %v365_v8 = vld [vmem:[#allocation2 + $0x6a] sm:$0xff]  ;;  %v383_v10 = vpack.c.bf16 %v363_v4, %v362_v3  ;;  %v345_v13 = vld [vmem:[#allocation2 + $0x38] sm:$0xff] }
  0x82   : > { %1679 = vmatprep.subr.bf16.mxu1 %v1823_v21  ;;  %v344_v12 = vld [vmem:[#allocation2 + $0x30] sm:$0xff]  ;;  %v386_v14 = vpack.c.bf16 %v365_v8, %v364_v7  ;;  %v366_v15 = vld [vmem:[#allocation2 + $0x7a] sm:$0xff]  ;;  %v367_v16 = vld [vmem:[#allocation2 + $0x82] sm:$0xff] }
  0x83   : > { %1520 = vmatpush3.bf16.msra.mxu0 %v1822_v20  ;;  %v368_v17 = vld [vmem:[#allocation2 + $0x92] sm:$0xff]  ;;  %v369_v18 = vld [vmem:[#allocation2 + $0x9a] sm:$0xff]  ;;  %v378_v19 = vpack.c.bf16 %v345_v13, %v344_v12  ;;  %v389_v20 = vpack.c.bf16 %v367_v16, %v366_v15  ;;  %v349_v53 = vld [vmem:[#allocation2 + $0x68] sm:$0xff] }
  0x84   : > { %1521 = vmatprep.subr.bf16.mxu0 %v1824_v22  ;;  %v347_v22 = vld [vmem:[#allocation2 + $0x50] sm:$0xff]  ;;  %v348_v52 = vld [vmem:[#allocation2 + $0x60] sm:$0xff]  ;;  %v350_v55 = vld [vmem:[#allocation2 + $0x78] sm:$0xff] }
  0x85   : > { %1680 = vmatpush3.bf16.msra.mxu1 %v1823_v21  ;;  %v346_v21 = vld [vmem:[#allocation2 + $0x48] sm:$0xff]  ;;  %v351_v56 = vld [vmem:[#allocation2 + $0x80] sm:$0xff]  ;;  %v352_v58 = vld [vmem:[#allocation2 + $0x90] sm:$0xff] }
  0x86   : > { %1681 = vmatprep.subr.bf16.mxu1 %v1826_v33  ;;  %v387_v57 = vpack.c.bf16 %v351_v56, %v350_v55  ;;  %v354_v61 = vld [vmem:[#allocation2 + $0xa8] sm:$0xff]  ;;  %v355_v62 = vld [vmem:[#allocation2 + $0xb0] sm:$0xff]  ;;  %v1842_v0 = vld [vmem:[#allocation8 + $0x58] sm:$0xff]  }
  0x87   : > { %1522 = vmatpush3.bf16.msra.mxu0 %v1825_v26  ;;  %v392_v26 = vpack.c.bf16 %v369_v18, %v368_v17  ;;  %v1843_v1 = vld [vmem:[#allocation8 + $0x88] sm:$0xff]   ;;  %v1845_v3 = vld [vmem:[#allocation8 + $0x60] sm:$0xff]   ;;  %v1847_v4 = vld [vmem:[#allocation8 + $0x90] sm:$0xff]  }
  0x88   : > { %1699 = vmatprep.subr.bf16.mxu0 %v1838_v50  ;;  %v1850_v7 = vld [vmem:[#allocation8 + $0x98] sm:$0xff]   ;;  %v1849_v8 = vld [vmem:[#allocation8 + $0x28] sm:$0xff]   ;;  %v1857_v15 = vld [vmem:[#allocation8 + $0xb0] sm:$0xff]  }
  0x89   : > { %1682 = vmatpush3.bf16.msra.mxu1 %v1826_v33  ;;  %v370_v33 = vld [vmem:[#allocation2 + $0xaa] sm:$0xff]  ;;  %v1854_v12 = vld [vmem:[#allocation8 + $0x78] sm:$0xff]  }
  0x8a   : > { %1587 = vmatprep.subr.bf16.mxu1 %v1835_v47  ;;  %628 = vmatmul.mubr.bf16.vlgmr.msra.gmra.mrb[0].mxu0 %v372_v54  ;;  %v371_v47 = vld [vmem:[#allocation2 + $0xb2] sm:$0xff]  ;;  %v384_v54 = vpack.c.bf16 %v349_v53, %v348_v52  ;;  %v1856_v13 = vld [vmem:[#allocation8 + $0xa8] sm:$0xff]  }
  0x8b   : > { %635 = vmatprep.mubr.bf16.mxu0 %v2263_v24  ;;  %1700 = vmatpush3.bf16.msra.mxu0 %v1838_v50  ;;  %v381_v50 = vpack.c.bf16 %v347_v22, %v346_v21  ;;  %v395_v51 = vpack.c.bf16 %v371_v47, %v370_v33  ;;  %v1858_v16 = vld [vmem:[#allocation8 + $0xb8] sm:$0xff]  }
  0x8c   : > { %1684 = vmatmul.mubr.bf16.vlgmr.msra.gmra.mrb[0].mxu1 %v377_v59  ;;  %v353_v59 = vld [vmem:[#allocation2 + $0x98] sm:$0xff]  ;;  %1701 = vmatprep.subr.bf16.mxu0 %v1843_v1 }
  0x8d   : > { %1687 = vmatprep.mubr.bf16.mxu1 %v380_v2  ;;  %1588 = vmatpush3.bf16.msra.mxu1 %v1836_v60  ;;  %v390_v60 = vpack.c.bf16 %v353_v59, %v352_v58  ;;  %v1844_v2 = vld [vmem:[#allocation8 + $0x18] sm:$0xff]  }
  0x8e   : > { %1589 = vmatprep.subr.bf16.mxu1 %v1837_v63  ;;  %v393_v63 = vpack.c.bf16 %v355_v62, %v354_v61 }
  0x8f   : > { %1702 = vmatpush3.bf16.msra.mxu0 %v1843_v1 }
  0x90   : > { %1703 = vmatprep.subr.bf16.mxu0 %v1847_v4 }
  0x91   : > { %1590 = vmatpush3.bf16.msra.mxu1 %v1839_v5  ;;  %v1846_v5 = vld [vmem:[#allocation8 + $0x20] sm:$0xff]  }
  0x92   : > { %636 = vmatmul.mubr.bf16.gmra.mrb[4].mxu0 %v375_v6  ;;  %1591 = vmatprep.subr.bf16.mxu1 %v1840_v9  ;;  %v1848_v6 = vld [vmem:[#allocation8 + $0x68] sm:$0xff]   ;;  %v1851_v9 = vld [vmem:[#allocation8 + $0x70] sm:$0xff]  }
  0x93   : > { %643 = vmatprep.mubr.bf16.mxu0 %v2266_v25  ;;  %1704 = vmatpush3.bf16.msra.mxu0 %v1847_v4 }
  0x94   : > { %1688 = vmatmul.mubr.bf16.gmra.mrb[4].mxu1 %v383_v10  ;;  %1705 = vmatprep.subr.bf16.mxu0 %v1850_v7  ;;  %v1853_v10 = vld [vmem:[#allocation8 + $0xa0] sm:$0xff]  }
  0x95   : > { %1691 = vmatprep.mubr.bf16.mxu1 %v386_v14  ;;  %1592 = vmatpush3.bf16.msra.mxu1 %v1841_v11  ;;  %v1852_v11 = vld [vmem:[#allocation8 + $0x30] sm:$0xff]   ;;  %v1855_v14 = vld [vmem:[#allocation8 + $0x38] sm:$0xff]  }
  0x96   : > { %1593 = vmatprep.subr.bf16.mxu1 %v1842_v0 }
  0x97   : > { %1706 = vmatpush3.bf16.msra.mxu0 %v1850_v7 }
  0x98   : > { %1707 = vmatprep.subr.bf16.mxu0 %v1853_v10 }
  0x99   : > { %1594 = vmatpush3.bf16.msra.mxu1 %v1844_v2 }
  0x9a   : > { %644 = vmatmul.mubr.bf16.gmra.mrb[8].mxu0 %v378_v19  ;;  %1595 = vmatprep.subr.bf16.mxu1 %v1845_v3  ;;  %v2342_v19 = vld [vmem:[%s2506_s2] ss:$0 sm:$0xff] }
  0x9b   : > { %651 = vmatprep.mubr.bf16.mxu0 %v2272_v30  ;;  %1708 = vmatpush3.bf16.msra.mxu0 %v1853_v10 }
  0x9c   : > { %1692 = vmatmul.mubr.bf16.gmra.mrb[8].mxu1 %v389_v20  ;;  %1709 = vmatprep.subr.bf16.mxu0 %v1856_v13 }
  0x9d   : > { %1695 = vmatprep.mubr.bf16.mxu1 %v392_v26  ;;  %1596 = vmatpush3.bf16.msra.mxu1 %v1846_v5 }
  0x9e   : > { %1597 = vmatprep.subr.bf16.mxu1 %v1848_v6 }
  0x9f   : > { %1710 = vmatpush3.bf16.msra.mxu0 %v1856_v13 }
  0xa0   : > { %1711 = vmatprep.subr.bf16.mxu0 %v1857_v15 }
  0xa1   : > { %1598 = vmatpush3.bf16.msra.mxu1 %v1849_v8 }
  0xa2   : > { %652 = vmatmul.mubr.bf16.gmra.mrb[12].mxu0 %v381_v50  ;;  %1599 = vmatprep.subr.bf16.mxu1 %v1851_v9 }
  0xa3   : > { %659 = vmatprep.mubr.bf16.mxu0 %v2275_v31  ;;  %1712 = vmatpush3.bf16.msra.mxu0 %v1857_v15 }
  0xa4   : > { %1696 = vmatmul.mubr.bf16.gmra.mrb[12].mxu1 %v395_v51  ;;  %1713 = vmatprep.subr.bf16.mxu0 %v1858_v16 }
  0xa5   : > { %1600 = vmatpush3.bf16.msra.mxu1 %v1852_v11 }
  0xa6   : > { %1601 = vmatprep.subr.bf16.mxu1 %v1854_v12 }
  0xa7   : > { %1714 = vmatpush3.bf16.msra.mxu0 %v1858_v16 }
  0xa9   : > { %1602 = vmatpush3.bf16.msra.mxu1 %v1855_v14 }
  0xaa   : > { %660 = vmatmul.mubr.bf16.gmra.mrb[16].mxu0 %v384_v54 }
  0xab   : > { %667 = vmatprep.mubr.bf16.mxu0 %v2278_v32 }
  0xb2   : > { %668 = vmatmul.mubr.bf16.gmra.mrb[20].mxu0 %v387_v57 }
  0xb3   : > { %675 = vmatprep.mubr.bf16.mxu0 %v2284_v37 }
  0xba   : > { %676 = vmatmul.mubr.bf16.gmra.mrb[24].mxu0 %v390_v60 }
  0xbb   : > { %683 = vmatprep.mubr.bf16.mxu0 %v2296_v40 }
  0xc2   : > { %684 = vmatmul.mubr.bf16.gmra.mrb[28].mxu0 %v393_v63 }
 0x15d   : > { %v1523_v17 = vpop.f32.mrb[0].mxu0 }
 0x15e   : > { %v1524_v18 = vpop.f32.mrb[1].mxu0 }
 0x15f   : > { %v1525_v20 = vadd.f32 %v1524_v18, %v1523_v17  ;;  %v1685_v21 = vpop.f32.mrb[0].mxu1  ;;  %v1526_v22 = vpop.f32.mrb[2].mxu0 }
 0x160   : > { %v726_v26 = vpop.f32.mrb[1].mxu1  ;;  %v1527_v33 = vpop.f32.mrb[3].mxu0 }
 0x161   : > { %v630_v47 = vadd.f32 %v1525_v20, %v2342_v19  ;;  %v1528_v50 = vadd.f32 %v1527_v33, %v1526_v22  ;;  %v1686_v51 = vpop.f32.mrb[2].mxu1 }
 0x162   : > { %v729_v52 = vpop.f32.mrb[3].mxu1 }
 0x163   : > { %v727_v53 = vadd.f32 %v726_v26, %v630_v47  ;;  %v633_v54 = vadd.f32 %v1528_v50, %v2342_v19 }
 0x165   : > { %v789_v55 = vmax.f32 %v727_v53, 0.0  ;;  %v730_v56 = vadd.f32 %v729_v52, %v633_v54  ;;  %v1529_v57 = vpop.f32.mrb[4].mxu0 }
 0x166   : > { %v1530_v58 = vpop.f32.mrb[5].mxu0 }
 0x167   : > { %805 = vst [vmem:[#allocation2 + $0x1] sm:$0xff] %v789_v55  ;;  %v790_v59 = vmax.f32 %v730_v56, 0.0  ;;  %v1531_v60 = vadd.f32 %v1530_v58, %v1529_v57  ;;  %v1532_v61 = vpop.f32.mrb[6].mxu0  ;;  %v2346_v62 = vpop.f32.mrb[4].mxu1 }
 0x168   : > { %v1533_v63 = vpop.f32.mrb[7].mxu0  ;;  %v742_v0 = vpop.f32.mrb[5].mxu1 }
 0x169   : > { %806 = vst [vmem:[#allocation2 + $0x9] sm:$0xff] %v790_v59  ;;  %v854_v1 = vpack.c.bf16 %v790_v59, %v789_v55  ;;  %v638_v2 = vadd.f32 %v1531_v60, %v2342_v19  ;;  %v1534_v3 = vadd.f32 %v1533_v63, %v1532_v61  ;;  %v1690_v4 = vpop.f32.mrb[6].mxu1 }
 0x16a   : > { %v745_v5 = vpop.f32.mrb[7].mxu1 }
 0x16b   : > { %v735_v6 = vadd.f32 %v1685_v21, %v638_v2  ;;  %v641_v7 = vadd.f32 %v1534_v3, %v2342_v19  ;;  %1108 = vmatprep.mubr.bf16.mxu1 %v854_v1 }
 0x16d   : > { %v791_v8 = vmax.f32 %v735_v6, 0.0  ;;  %v738_v9 = vadd.f32 %v1686_v51, %v641_v7  ;;  %v1535_v10 = vpop.f32.mrb[8].mxu0 }
 0x16e   : > { %v1536_v11 = vpop.f32.mrb[9].mxu0  ;;  %v821_v15 = vld [vmem:[#allocation2] sm:$0xff] }
 0x16f   : > { %807 = vst [vmem:[#allocation2 + $0x19] sm:$0xff] %v791_v8  ;;  %v792_v12 = vmax.f32 %v738_v9, 0.0  ;;  %v1537_v13 = vadd.f32 %v1536_v11, %v1535_v10  ;;  %v1538_v14 = vpop.f32.mrb[10].mxu0  ;;  %v2350_v16 = vpop.f32.mrb[8].mxu1 }
 0x170   : > { %v1539_v17 = vpop.f32.mrb[11].mxu0  ;;  %v822_v18 = vld [vmem:[#allocation2 + $0x8] sm:$0xff]  ;;  %v758_v26 = vpop.f32.mrb[9].mxu1 }
 0x171   : > { %v837_v20 = vld [vmem:[#allocation2 + $0x2] sm:$0xff]  ;;  %v838_v22 = vld [vmem:[#allocation2 + $0xa] sm:$0xff]  ;;  %808 = vst [vmem:[#allocation2 + $0x21] sm:$0xff] %v792_v12  ;;  %v646_v21 = vadd.f32 %v1537_v13, %v2342_v19  ;;  %v1540_v33 = vadd.f32 %v1539_v17, %v1538_v14  ;;  %v853_v47 = vpack.c.bf16 %v822_v18, %v821_v15  ;;  %v2353_v51 = vpop.f32.mrb[10].mxu1  ;;  %v857_v52 = vpack.c.bf16 %v792_v12, %v791_v8 }
 0x172   : > { %v855_v50 = vpack.c.bf16 %v838_v22, %v837_v20  ;;  %v761_v53 = vpop.f32.mrb[11].mxu1 }
 0x173   : > { %v743_v54 = vadd.f32 %v742_v0, %v646_v21  ;;  %v649_v55 = vadd.f32 %v1540_v33, %v2342_v19  ;;  %1109 = vmatmul.mubr.bf16.vlgmr.msra.gmra.mrb[16].mxu1 %v853_v47 }
 0x174   : > { %1715 = vmatprep.mubr.bf16.mxu0 %v855_v50  ;;  %1116 = vmatprep.mubr.bf16.mxu1 %v857_v52 }
 0x175   : > { %v793_v56 = vmax.f32 %v743_v54, 0.0  ;;  %v746_v57 = vadd.f32 %v745_v5, %v649_v55  ;;  %v1541_v58 = vpop.f32.mrb[12].mxu0 }
 0x176   : > { %v1542_v59 = vpop.f32.mrb[13].mxu0  ;;  %v823_v1 = vld [vmem:[#allocation2 + $0x18] sm:$0xff] }
 0x177   : > { %809 = vst [vmem:[#allocation2 + $0x31] sm:$0xff] %v793_v56  ;;  %v794_v60 = vmax.f32 %v746_v57, 0.0  ;;  %v1543_v61 = vadd.f32 %v1542_v59, %v1541_v58  ;;  %v1544_v63 = vpop.f32.mrb[14].mxu0  ;;  %v2356_v2 = vpop.f32.mrb[12].mxu1 }
 0x178   : > { %v1545_v3 = vpop.f32.mrb[15].mxu0  ;;  %v824_v6 = vld [vmem:[#allocation2 + $0x20] sm:$0xff]  ;;  %v2358_v8 = vpop.f32.mrb[13].mxu1 }
 0x179   : > { %v839_v7 = vld [vmem:[#allocation2 + $0x1a] sm:$0xff]  ;;  %v840_v0 = vld [vmem:[#allocation2 + $0x22] sm:$0xff]  ;;  %810 = vst [vmem:[#allocation2 + $0x39] sm:$0xff] %v794_v60  ;;  %v860_v9 = vpack.c.bf16 %v794_v60, %v793_v56  ;;  %v654_v10 = vadd.f32 %v1543_v61, %v2342_v19  ;;  %v1546_v5 = vadd.f32 %v1545_v3, %v1544_v63  ;;  %v856_v11 = vpack.c.bf16 %v824_v6, %v823_v1  ;;  %v2361_v12 = vpop.f32.mrb[14].mxu1 }
 0x17a   : > { %v858_v13 = vpack.c.bf16 %v840_v0, %v839_v7  ;;  %v2363_v14 = vpop.f32.mrb[15].mxu1 }
 0x17b   : > { %v751_v15 = vadd.f32 %v2346_v62, %v654_v10  ;;  %v657_v17 = vadd.f32 %v1546_v5, %v2342_v19  ;;  %1117 = vmatmul.mubr.bf16.gmra.mrb[20].mxu1 %v856_v11 }
 0x17c   : > { %1716 = vmatmul.mubr.bf16.vlgmr.msra.gmra.mrb[32].mxu0 %v858_v13  ;;  %1124 = vmatprep.mubr.bf16.mxu1 %v860_v9 }
 0x17d   : > { %v795_v18 = vmax.f32 %v751_v15, 0.0  ;;  %v754_v20 = vadd.f32 %v1690_v4, %v657_v17  ;;  %v1547_v22 = vpop.f32.mrb[16].mxu0 }
 0x17e   : > { %v1548_v21 = vpop.f32.mrb[17].mxu0  ;;  %v825_v52 = vld [vmem:[#allocation2 + $0x30] sm:$0xff] }
 0x17f   : > { %811 = vst [vmem:[#allocation2 + $0x49] sm:$0xff] %v795_v18  ;;  %v796_v33 = vmax.f32 %v754_v20, 0.0  ;;  %v1549_v47 = vadd.f32 %v1548_v21, %v1547_v22  ;;  %v1550_v50 = vpop.f32.mrb[18].mxu0 }
 0x180   : > { %v1551_v54 = vpop.f32.mrb[19].mxu0  ;;  %v826_v55 = vld [vmem:[#allocation2 + $0x38] sm:$0xff] }
 0x181   : > { %v841_v56 = vld [vmem:[#allocation2 + $0x32] sm:$0xff]  ;;  %v842_v57 = vld [vmem:[#allocation2 + $0x3a] sm:$0xff]  ;;  %812 = vst [vmem:[#allocation2 + $0x51] sm:$0xff] %v796_v33  ;;  %v662_v62 = vadd.f32 %v1549_v47, %v2342_v19  ;;  %v1552_v58 = vadd.f32 %v1551_v54, %v1550_v50  ;;  %v859_v59 = vpack.c.bf16 %v826_v55, %v825_v52  ;;  %v863_v61 = vpack.c.bf16 %v796_v33, %v795_v18 }
 0x182   : > { %v861_v60 = vpack.c.bf16 %v842_v57, %v841_v56 }
 0x183   : > { %v759_v63 = vadd.f32 %v758_v26, %v662_v62  ;;  %v665_v4 = vadd.f32 %v1552_v58, %v2342_v19  ;;  %1125 = vmatmul.mubr.bf16.gmra.mrb[24].mxu1 %v859_v59 }
 0x184   : > { %1719 = vmatprep.mubr.bf16.mxu0 %v861_v60  ;;  %1132 = vmatprep.mubr.bf16.mxu1 %v863_v61 }
 0x185   : > { %v797_v1 = vmax.f32 %v759_v63, 0.0  ;;  %v762_v3 = vadd.f32 %v761_v53, %v665_v4  ;;  %v1553_v6 = vpop.f32.mrb[20].mxu0 }
 0x186   : > { %v1554_v7 = vpop.f32.mrb[21].mxu0  ;;  %v827_v5 = vld [vmem:[#allocation2 + $0x48] sm:$0xff] }
 0x187   : > { %813 = vst [vmem:[#allocation2 + $0x61] sm:$0xff] %v797_v1  ;;  %v798_v0 = vmax.f32 %v762_v3, 0.0  ;;  %v1555_v9 = vadd.f32 %v1554_v7, %v1553_v6  ;;  %v1556_v10 = vpop.f32.mrb[22].mxu0 }
 0x188   : > { %v1557_v11 = vpop.f32.mrb[23].mxu0  ;;  %v828_v13 = vld [vmem:[#allocation2 + $0x50] sm:$0xff] }
 0x189   : > { %v843_v15 = vld [vmem:[#allocation2 + $0x4a] sm:$0xff]  ;;  %v844_v17 = vld [vmem:[#allocation2 + $0x52] sm:$0xff]  ;;  %814 = vst [vmem:[#allocation2 + $0x69] sm:$0xff] %v798_v0  ;;  %v866_v26 = vpack.c.bf16 %v798_v0, %v797_v1  ;;  %v670_v18 = vadd.f32 %v1555_v9, %v2342_v19  ;;  %v1558_v20 = vadd.f32 %v1557_v11, %v1556_v10  ;;  %v862_v22 = vpack.c.bf16 %v828_v13, %v827_v5 }
 0x18a   : > { %v864_v21 = vpack.c.bf16 %v844_v17, %v843_v15 }
 0x18b   : > { %v767_v53 = vadd.f32 %v2350_v16, %v670_v18  ;;  %v673_v33 = vadd.f32 %v1558_v20, %v2342_v19  ;;  %1133 = vmatmul.mubr.bf16.gmra.mrb[28].mxu1 %v862_v22 }
 0x18c   : > { %1720 = vmatmul.mubr.bf16.gmra.mrb[36].mxu0 %v864_v21  ;;  %1140 = vmatprep.mubr.bf16.mxu1 %v866_v26 }
 0x18d   : > { %v799_v47 = vmax.f32 %v767_v53, 0.0  ;;  %v770_v50 = vadd.f32 %v2353_v51, %v673_v33  ;;  %v1559_v52 = vpop.f32.mrb[24].mxu0 }
 0x18e   : > { %v1560_v54 = vpop.f32.mrb[25].mxu0  ;;  %v829_v62 = vld [vmem:[#allocation2 + $0x60] sm:$0xff] }
 0x18f   : > { %815 = vst [vmem:[#allocation2 + $0x79] sm:$0xff] %v799_v47  ;;  %v800_v55 = vmax.f32 %v770_v50, 0.0  ;;  %v1561_v56 = vadd.f32 %v1560_v54, %v1559_v52  ;;  %v1562_v57 = vpop.f32.mrb[26].mxu0 }
 0x190   : > { %v1563_v58 = vpop.f32.mrb[27].mxu0  ;;  %v830_v59 = vld [vmem:[#allocation2 + $0x68] sm:$0xff] }
 0x191   : > { %v845_v60 = vld [vmem:[#allocation2 + $0x62] sm:$0xff]  ;;  %v846_v61 = vld [vmem:[#allocation2 + $0x6a] sm:$0xff]  ;;  %816 = vst [vmem:[#allocation2 + $0x81] sm:$0xff] %v800_v55  ;;  %v678_v16 = vadd.f32 %v1561_v56, %v2342_v19  ;;  %v1564_v63 = vadd.f32 %v1563_v58, %v1562_v57  ;;  %v865_v4 = vpack.c.bf16 %v830_v59, %v829_v62  ;;  %v869_v3 = vpack.c.bf16 %v800_v55, %v799_v47 }
 0x192   : > { %v867_v1 = vpack.c.bf16 %v846_v61, %v845_v60 }
 0x193   : > { %v775_v51 = vadd.f32 %v2358_v8, %v678_v16  ;;  %v681_v6 = vadd.f32 %v1564_v63, %v2342_v19  ;;  %1141 = vmatmul.mubr.bf16.gmra.mrb[32].mxu1 %v865_v4 }
 0x194   : > { %1723 = vmatprep.mubr.bf16.mxu0 %v867_v1  ;;  %1148 = vmatprep.mubr.bf16.mxu1 %v869_v3 }
 0x195   : > { %v801_v7 = vmax.f32 %v775_v51, 0.0  ;;  %v778_v0 = vadd.f32 %v2363_v14, %v681_v6  ;;  %v1565_v9 = vpop.f32.mrb[28].mxu0 }
 0x196   : > { %v1566_v10 = vpop.f32.mrb[29].mxu0  ;;  %v831_v15 = vld [vmem:[#allocation2 + $0x78] sm:$0xff] }
 0x197   : > { %817 = vst [vmem:[#allocation2 + $0x91] sm:$0xff] %v801_v7  ;;  %v802_v5 = vmax.f32 %v778_v0, 0.0  ;;  %v1567_v11 = vadd.f32 %v1566_v10, %v1565_v9  ;;  %v1568_v13 = vpop.f32.mrb[30].mxu0  ;;  %v2384_v0 = vld [vmem:[%s2508_s4] ss:$0 sm:$0xff] }
 0x198   : > { %v1569_v17 = vpop.f32.mrb[31].mxu0  ;;  %v832_v26 = vld [vmem:[#allocation2 + $0x80] sm:$0xff] }
 0x199   : > { %v847_v18 = vld [vmem:[#allocation2 + $0x7a] sm:$0xff]  ;;  %v848_v20 = vld [vmem:[#allocation2 + $0x82] sm:$0xff]  ;;  %818 = vst [vmem:[#allocation2 + $0x99] sm:$0xff] %v802_v5  ;;  %v872_v8 = vpack.c.bf16 %v802_v5, %v801_v7  ;;  %v686_v22 = vadd.f32 %v1567_v11, %v2342_v19  ;;  %v1570_v21 = vadd.f32 %v1569_v17, %v1568_v13  ;;  %v868_v53 = vpack.c.bf16 %v832_v26, %v831_v15 }
 0x19a   : > { %v870_v33 = vpack.c.bf16 %v848_v20, %v847_v18 }
 0x19b   : > { %v783_v14 = vadd.f32 %v2356_v2, %v686_v22  ;;  %v689_v47 = vadd.f32 %v1570_v21, %v2342_v19  ;;  %1149 = vmatmul.mubr.bf16.gmra.mrb[36].mxu1 %v868_v53 }
 0x19c   : > { %1724 = vmatmul.mubr.bf16.gmra.mrb[40].mxu0 %v870_v33  ;;  %1156 = vmatprep.mubr.bf16.mxu1 %v872_v8 }
 0x19d   : > { %v803_v50 = vmax.f32 %v783_v14, 0.0  ;;  %v786_v52 = vadd.f32 %v2361_v12, %v689_v47 }
 0x19e   : > { %v833_v55 = vld [vmem:[#allocation2 + $0x90] sm:$0xff] }
 0x19f   : > { %819 = vst [vmem:[#allocation2 + $0xa9] sm:$0xff] %v803_v50  ;;  %v804_v54 = vmax.f32 %v786_v52, 0.0 }
 0x1a0   : > { %v834_v56 = vld [vmem:[#allocation2 + $0x98] sm:$0xff] }
 0x1a1   : > { %v849_v57 = vld [vmem:[#allocation2 + $0x92] sm:$0xff]  ;;  %v850_v62 = vld [vmem:[#allocation2 + $0x9a] sm:$0xff]  ;;  %820 = vst [vmem:[#allocation2 + $0xb1] sm:$0xff] %v804_v54  ;;  %v871_v58 = vpack.c.bf16 %v834_v56, %v833_v55  ;;  %v875_v60 = vpack.c.bf16 %v804_v54, %v803_v50 }
 0x1a2   : > { %v873_v59 = vpack.c.bf16 %v850_v62, %v849_v57 }
 0x1a3   : > { %1157 = vmatmul.mubr.bf16.gmra.mrb[40].mxu1 %v871_v58 }
 0x1a4   : > { %1727 = vmatprep.mubr.bf16.mxu0 %v873_v59  ;;  %1164 = vmatprep.mubr.bf16.mxu1 %v875_v60 }
 0x1a6   : > { %v835_v19 = vld [vmem:[#allocation2 + $0xa8] sm:$0xff] }
 0x1a8   : > { %v836_v2 = vld [vmem:[#allocation2 + $0xb0] sm:$0xff] }
 0x1a9   : > { %v851_v61 = vld [vmem:[#allocation2 + $0xaa] sm:$0xff]  ;;  %v852_v16 = vld [vmem:[#allocation2 + $0xb2] sm:$0xff]  ;;  %v874_v63 = vpack.c.bf16 %v836_v2, %v835_v19 }
 0x1aa   : > { %v876_v4 = vpack.c.bf16 %v852_v16, %v851_v61 }
 0x1ab   : > { %1165 = vmatmul.mubr.bf16.gmra.mrb[44].mxu1 %v874_v63 }
 0x1ac   : > { %1728 = vmatmul.mubr.bf16.gmra.mrb[44].mxu0 %v876_v4 }
 0x246   : > { %v1603_v12 = vpop.f32.mrb[16].mxu1 }
 0x247   : > { %v1604_v1 = vpop.f32.mrb[17].mxu1 }
 0x248   : > { %v1605_v3 = vadd.f32 %v1604_v1, %v1603_v12  ;;  %v1606_v51 = vpop.f32.mrb[18].mxu1 }
 0x249   : > { %v1607_v6 = vpop.f32.mrb[19].mxu1 }
 0x24a   : > { %v1608_v7 = vadd.f32 %v1607_v6, %v1606_v51  ;;  %v1111_v11 = vadd.f32 %v1605_v3, %v2384_v0 }
 0x24c   : > { %v1114_v8 = vadd.f32 %v1608_v7, %v2384_v0 }
 0x24e   : > { %v1609_v9 = vpop.f32.mrb[20].mxu1 }
 0x24f   : > { %v1717_v10 = vpop.f32.mrb[32].mxu0  ;;  %v1610_v5 = vpop.f32.mrb[21].mxu1 }
 0x250   : > { %v1611_v13 = vadd.f32 %v1610_v5, %v1609_v9  ;;  %v1207_v15 = vpop.f32.mrb[33].mxu0  ;;  %v1612_v17 = vpop.f32.mrb[22].mxu1 }
 0x251   : > { %v1208_v26 = vadd.f32 %v1207_v15, %v1111_v11  ;;  %v1718_v18 = vpop.f32.mrb[34].mxu0  ;;  %v1613_v20 = vpop.f32.mrb[23].mxu1 }
 0x252   : > { %v1119_v22 = vadd.f32 %v1611_v13, %v2384_v0  ;;  %v1614_v21 = vadd.f32 %v1613_v20, %v1612_v17  ;;  %v1210_v53 = vpop.f32.mrb[35].mxu0 }
 0x253   : > { %v1270_v33 = vadd.f32 %v1208_v26, %v308_v27  ;;  %v1211_v14 = vadd.f32 %v1210_v53, %v1114_v8 }
 0x254   : > { %v1216_v47 = vadd.f32 %v1717_v10, %v1119_v22  ;;  %v1122_v50 = vadd.f32 %v1614_v21, %v2384_v0 }
 0x255   : > { %v1286_v52 = vmax.f32 %v1270_v33, 0.0  ;;  %v1271_v54 = vadd.f32 %v1211_v14, %v309_v28 }
 0x256   : > { %v1272_v55 = vadd.f32 %v1216_v47, %v310_v29  ;;  %v1219_v56 = vadd.f32 %v1718_v18, %v1122_v50  ;;  %v1615_v57 = vpop.f32.mrb[24].mxu1 }
 0x257   : > { %1302 = vst [vmem:[%s2397_s28] sm:$0xff] %v1286_v52  ;;  %v1287_v27 = vmax.f32 %v1271_v54, 0.0  ;;  %v1616_v62 = vpop.f32.mrb[25].mxu1 }
 0x258   : > { %v1288_v58 = vmax.f32 %v1272_v55, 0.0  ;;  %v1273_v59 = vadd.f32 %v1219_v56, %v311_v34  ;;  %v1617_v23 = vadd.f32 %v1616_v62, %v1615_v57  ;;  %v1618_v28 = vpop.f32.mrb[26].mxu1 }
 0x259   : > { %1303 = vst [vmem:[%s2397_s28 + $0x8] sm:$0xff] %v1287_v27  ;;  %v1619_v60 = vpop.f32.mrb[27].mxu1 }
 0x25a   : > { %1304 = vst [vmem:[%s2397_s28 + $0x10] sm:$0xff] %v1288_v58  ;;  %v1289_v29 = vmax.f32 %v1273_v59, 0.0  ;;  %v1620_v19 = vadd.f32 %v1619_v60, %v1618_v28  ;;  %v1127_v63 = vadd.f32 %v1617_v23, %v2384_v0 }
 0x25c   : > { %1305 = vst [vmem:[%s2397_s28 + $0x18] sm:$0xff] %v1289_v29  ;;  %v1130_v51 = vadd.f32 %v1620_v19, %v2384_v0 }
 0x25e   : > { %v1621_v2 = vpop.f32.mrb[28].mxu1 }
 0x25f   : > { %v1721_v61 = vpop.f32.mrb[36].mxu0  ;;  %v1622_v16 = vpop.f32.mrb[29].mxu1 }
 0x260   : > { %v1623_v4 = vadd.f32 %v1622_v16, %v1621_v2  ;;  %v1223_v12 = vpop.f32.mrb[37].mxu0  ;;  %v1624_v1 = vpop.f32.mrb[30].mxu1 }
 0x261   : > { %v1224_v3 = vadd.f32 %v1223_v12, %v1127_v63  ;;  %v1722_v24 = vpop.f32.mrb[38].mxu0  ;;  %v1625_v34 = vpop.f32.mrb[31].mxu1 }
 0x262   : > { %v1135_v6 = vadd.f32 %v1623_v4, %v2384_v0  ;;  %v1626_v7 = vadd.f32 %v1625_v34, %v1624_v1  ;;  %v1226_v9 = vpop.f32.mrb[39].mxu0 }
 0x263   : > { %v1274_v10 = vadd.f32 %v1224_v3, %v312_v35  ;;  %v1227_v5 = vadd.f32 %v1226_v9, %v1130_v51 }
 0x264   : > { %v1232_v11 = vadd.f32 %v1721_v61, %v1135_v6  ;;  %v1138_v13 = vadd.f32 %v1626_v7, %v2384_v0 }
 0x265   : > { %v1290_v15 = vmax.f32 %v1274_v10, 0.0  ;;  %v1275_v17 = vadd.f32 %v1227_v5, %v313_v36 }
 0x266   : > { %v1276_v26 = vadd.f32 %v1232_v11, %v314_v38  ;;  %v1235_v18 = vadd.f32 %v1722_v24, %v1138_v13  ;;  %v1627_v20 = vpop.f32.mrb[32].mxu1 }
 0x267   : > { %1306 = vst [vmem:[%s2397_s28 + $0x20] sm:$0xff] %v1290_v15  ;;  %v1291_v8 = vmax.f32 %v1275_v17, 0.0  ;;  %v1628_v22 = vpop.f32.mrb[33].mxu1 }
 0x268   : > { %v1292_v35 = vmax.f32 %v1276_v26, 0.0  ;;  %v1277_v21 = vadd.f32 %v1235_v18, %v315_v39  ;;  %v1629_v53 = vadd.f32 %v1628_v22, %v1627_v20  ;;  %v1630_v33 = vpop.f32.mrb[34].mxu1 }
 0x269   : > { %1307 = vst [vmem:[%s2397_s28 + $0x28] sm:$0xff] %v1291_v8  ;;  %v1631_v14 = vpop.f32.mrb[35].mxu1 }
 0x26a   : > { %1308 = vst [vmem:[%s2397_s28 + $0x30] sm:$0xff] %v1292_v35  ;;  %v1293_v25 = vmax.f32 %v1277_v21, 0.0  ;;  %v1632_v36 = vadd.f32 %v1631_v14, %v1630_v33  ;;  %v1143_v52 = vadd.f32 %v1629_v53, %v2384_v0 }
 0x26c   : > { %1309 = vst [vmem:[%s2397_s28 + $0x38] sm:$0xff] %v1293_v25  ;;  %v1146_v27 = vadd.f32 %v1632_v36, %v2384_v0 }
 0x26e   : > { %v1633_v47 = vpop.f32.mrb[36].mxu1 }
 0x26f   : > { %v1725_v50 = vpop.f32.mrb[40].mxu0  ;;  %v1634_v38 = vpop.f32.mrb[37].mxu1 }
 0x270   : > { %v1635_v54 = vadd.f32 %v1634_v38, %v1633_v47  ;;  %v1239_v55 = vpop.f32.mrb[41].mxu0  ;;  %v1636_v56 = vpop.f32.mrb[38].mxu1 }
 0x271   : > { %v1240_v57 = vadd.f32 %v1239_v55, %v1143_v52  ;;  %v1726_v30 = vpop.f32.mrb[42].mxu0  ;;  %v1637_v39 = vpop.f32.mrb[39].mxu1 }
 0x272   : > { %v1151_v62 = vadd.f32 %v1635_v54, %v2384_v0  ;;  %v1638_v58 = vadd.f32 %v1637_v39, %v1636_v56  ;;  %v1242_v59 = vpop.f32.mrb[43].mxu0 }
 0x273   : > { %v1278_v23 = vadd.f32 %v1240_v57, %v316_v41  ;;  %v1243_v28 = vadd.f32 %v1242_v59, %v1146_v27 }
 0x274   : > { %v1248_v60 = vadd.f32 %v1725_v50, %v1151_v62  ;;  %v1154_v29 = vadd.f32 %v1638_v58, %v2384_v0 }
 0x275   : > { %v1294_v19 = vmax.f32 %v1278_v23, 0.0  ;;  %v1279_v2 = vadd.f32 %v1243_v28, %v317_v42 }
 0x276   : > { %v1280_v61 = vadd.f32 %v1248_v60, %v318_v43  ;;  %v1251_v16 = vadd.f32 %v1726_v30, %v1154_v29  ;;  %v1639_v63 = vpop.f32.mrb[40].mxu1 }
 0x277   : > { %1310 = vst [vmem:[%s2397_s28 + $0x40] sm:$0xff] %v1294_v19  ;;  %v1295_v4 = vmax.f32 %v1279_v2, 0.0  ;;  %v1640_v12 = vpop.f32.mrb[41].mxu1 }
 0x278   : > { %v1296_v41 = vmax.f32 %v1280_v61, 0.0  ;;  %v1281_v1 = vadd.f32 %v1251_v16, %v319_v44  ;;  %v1641_v3 = vadd.f32 %v1640_v12, %v1639_v63  ;;  %v1642_v24 = vpop.f32.mrb[42].mxu1 }
 0x279   : > { %1311 = vst [vmem:[%s2397_s28 + $0x48] sm:$0xff] %v1295_v4  ;;  %v1643_v34 = vpop.f32.mrb[43].mxu1 }
 0x27a   : > { %1312 = vst [vmem:[%s2397_s28 + $0x50] sm:$0xff] %v1296_v41  ;;  %v1297_v31 = vmax.f32 %v1281_v1, 0.0  ;;  %v1644_v42 = vadd.f32 %v1643_v34, %v1642_v24  ;;  %v1159_v43 = vadd.f32 %v1641_v3, %v2384_v0 }
 0x27c   : > { %1313 = vst [vmem:[%s2397_s28 + $0x58] sm:$0xff] %v1297_v31  ;;  %v1162_v44 = vadd.f32 %v1644_v42, %v2384_v0 }
 0x27e   : > { %v1645_v51 = vpop.f32.mrb[44].mxu1 }
 0x27f   : > { %v1729_v6 = vpop.f32.mrb[44].mxu0  ;;  %v1646_v7 = vpop.f32.mrb[45].mxu1 }
 0x280   : > { %v1255_v9 = vpop.f32.mrb[45].mxu0  ;;  %v1647_v10 = vadd.f32 %v1646_v7, %v1645_v51  ;;  %v1648_v11 = vpop.f32.mrb[46].mxu1 }
 0x281   : > { %v1256_v5 = vadd.f32 %v1255_v9, %v1159_v43  ;;  %v1730_v32 = vpop.f32.mrb[46].mxu0  ;;  %v1649_v13 = vpop.f32.mrb[47].mxu1 }
 0x282   : > { %v1258_v15 = vpop.f32.mrb[47].mxu0  ;;  %v1167_v17 = vadd.f32 %v1647_v10, %v2384_v0  ;;  %v1650_v18 = vadd.f32 %v1649_v13, %v1648_v11 }
 0x283   : > { %v1282_v26 = vadd.f32 %v1256_v5, %v320_v45  ;;  %v1259_v20 = vadd.f32 %v1258_v15, %v1162_v44 }
 0x284   : > { %v1264_v8 = vadd.f32 %v1729_v6, %v1167_v17  ;;  %v1170_v35 = vadd.f32 %v1650_v18, %v2384_v0 }
 0x285   : > { %v1298_v22 = vmax.f32 %v1282_v26, 0.0  ;;  %v1283_v21 = vadd.f32 %v1259_v20, %v321_v46 }
 0x286   : > { %v1284_v53 = vadd.f32 %v1264_v8, %v322_v48  ;;  %v1267_v33 = vadd.f32 %v1730_v32, %v1170_v35 }
 0x287   : > { %1314 = vst [vmem:[%s2397_s28 + $0x60] sm:$0xff] %v1298_v22  ;;  %v1299_v14 = vmax.f32 %v1283_v21, 0.0 }
 0x288   : > { %v1300_v45 = vmax.f32 %v1284_v53, 0.0  ;;  %v1285_v25 = vadd.f32 %v1267_v33, %v323_v49 }
 0x289   : > { %1315 = vst [vmem:[%s2397_s28 + $0x68] sm:$0xff] %v1299_v14 }
 0x28a   : > { %1316 = vst [vmem:[%s2397_s28 + $0x70] sm:$0xff] %v1300_v45  ;;  %v1301_v37 = vmax.f32 %v1285_v25, 0.0 }
 0x28c   : > { %1317 = vst [vmem:[%s2397_s28 + $0x78] sm:$0xff] %v1301_v37 }
 0x28d   : > { %1966 = shalt.err (!%p1963_p1)
}
 0x28e   : > { %s1967_s24 = scalar_lea.hbm %s2456_s17, 2048  ;;  %s1971_s16 = scalar_lea.hbm %s2509_s5, 4096 }
 0x28f   : > { %p1968_p13 = scmp.ne.s32.totalorder %s2456_s17, %s1967_s24  ;;  %p1972_p4 = scmp.lt.u32.totalorder %s2456_s17, %s2509_s5 }
 0x290   : > { %p1973_p5 = scmp.lt.u32.totalorder %s1971_s16, %s1967_s24  ;;  %p1975_p11 = scmp.lt.u32.totalorder %s1967_s24, %s2456_s17 }
 0x291   : > { %p1969_p6 = pnand %p1968_p13, %p2523_p0 }
 0x292   : > { %p1974_p8 = por %p1973_p5, %p1972_p4 }
 0x293   : > { %p1970_p10 = pneg %p1969_p6 }
 0x294   : > { %p1976_p2 = por %p1975_p11, %p1974_p8 }
 0x296   : > { %p1977_p3 = pnand %p1976_p2, %p1970_p10 }
 0x298   : > { %1980 = shalt.err (!%p1977_p3)
}
 0x299   : > { %s2032_s12 = smov 128   ;;  %s2033_s30 = smov 8  }
 0x29a   : > { %1741 = dma.vmem_to_hbm [thread:$0]  (%p2523_p0), %s2458_s13, 2048, %s2456_s17, %s1319_s22, %s2032_s12, %s2032_s12, %s2033_s30  }
 0x29b PF: > { %s1348_s11 = sand.u32 1, %s2011_s18   ;;  %p2524_p7 = scmp.ne.s32.totalorder %s2514_s25, 0 }
 0x29c   : > { %p2525_p9 = scmp.ge.s32.totalorder %s2023_s21, 2  ;;  %s1349_s7 = scalar_lea.sflag [#allocation5], %s1348_s11 }
 0x29e   : > { %p1755_p12 = pnand %p2525_p9, %p2524_p7 }
 0x2a0   : > { %2006 = dma.done.wait (!%p1755_p12), %s1349_s7, 2048  }
 0x2a1   : > { %2008 = vsyncadd (!%p1755_p12), %s1349_s7, 4294965248  ;;  %p19_p1 = scmp.ge.s32.totalorder %s2180_s29, 4   ;;  %s2526_s18 = smov %s2015_s19 }
 0x2a2   : > { %s2527_s19 = smov %s2019_s20  ;;  %s2528_s20 = smov %s2196_s27 }
 0x2a3   : > { %s2529_s21 = smov %s2180_s29  ;;  %21 = sbr.rel (!%p19_p1) target bundleno = 6 (0x6), region = 93 }
 0x2aa   :  { %1354 = vsyncpa [#allocation4], 1 }
 0x2ab   :  { %1356 = vsyncpa [#allocation4 + $0x1], 1 }
 0x2ac   :  { %1357 = vsyncpa [#allocation7], 1 }
 0x2ad   :  { %1358 = vsyncpa [#allocation5], 1 }
 0x2ae   :  { %1360 = vsyncpa [#allocation5 + $0x1], 1 }

</bundles_post_ra>
